<compile_context>
chip_gen: v7x
topology: tpu7x:2x2x1
jax: 0.10.0
libtpu: 0.0.40
codegen_flags: <defaults>
</compile_context>

<pallas_src>
import jax
import jax.numpy as jnp
from jax import lax
from jax.experimental import pallas as pl
from jax.experimental.pallas import tpu as pltpu  # noqa: F401  (TPU backend import)

# ---------------- problem sizes ----------------
N, C_IN, H, W = 2, 4, 16, 16
C_OUT = 8
KH = KW = 3
PAD = 1
STRIDE = 1
H_OUT, W_OUT = H, W                 # stride=1, padding=1, k=3 -> same spatial size
K_DIM = KH * KW * C_IN              # 36  (real reduction length)
K_PAD = 40                          # padded to a sublane multiple; row 36 = bias row
HW = H_OUT * W_OUT                  # 256


def conv_gemm_kernel(p_ref, w_ref, o_ref):
    """Whole batch in one invocation: out[n]^T = W_mat @ patches[n] (bias folded in).

    p_ref : (N, K_PAD, HW)   im2col patches (+ constant ones row for the bias)
    w_ref : (C_OUT, K_PAD)   folded conv weights (+ bias column)
    o_ref : (N, C_OUT, HW)   channel-major output -> lane-dense (256-wide) stores
    """
    w = w_ref[...]
    for n in range(p_ref.shape[0]):          # static unroll (N = 2)
        o_ref[n] = jnp.dot(
            w, p_ref[n], preferred_element_type=jnp.float32
        ).astype(o_ref.dtype)


def prepare_conv_params(weight_oihw, bias):
    """One-time weight folding (hoisted out of the per-call path; weights are static).

    OIHW -> (O, KH, KW, C) -> (O, 36); K ordering = (tap-major, channel-minor),
    matching the im2col layout below.  Column 36 carries the bias, 37..39 zero-pad.
    """
    w_mat = jnp.transpose(weight_oihw, (0, 2, 3, 1)).reshape(C_OUT, K_DIM)
    zpad = jnp.zeros((C_OUT, K_PAD - K_DIM - 1), w_mat.dtype)
    return jnp.concatenate([w_mat, bias.reshape(C_OUT, 1), zpad], axis=1)  # (8, 40)


@jax.jit
def dummy_conv_forward(x_nchw, w_mat):
    """Matches nn.Conv2d(4, 8, 3, stride=1, padding=1).forward on NCHW input."""
    n = x_nchw.shape[0]
    # im2col in the wrapper (review-sanctioned): pad + 9 shifted views + one stack.
    x_pad = jnp.pad(x_nchw, ((0, 0), (0, 0), (PAD, PAD), (PAD, PAD)))
    taps = [x_pad[:, :, kh:kh + H_OUT, kw:kw + W_OUT]
            for kh in range(KH) for kw in range(KW)]             # 9 x (n, C, H, W)
    # Extra constant "tap": channel 0 = ones (pairs with the bias column of w_mat),
    # channels 1..3 = zeros (K padding to 40).  Constant, folded by XLA.
    bias_tap = jnp.concatenate(
        [jnp.ones((n, 1, H_OUT, W_OUT), x_nchw.dtype),
         jnp.zeros((n, C_IN - 1, H_OUT, W_OUT), x_nchw.dtype)], axis=1)
    patches = jnp.stack(taps + [bias_tap], axis=1).reshape(n, K_PAD, HW)  # (n,40,256)

    out_flat = pl.pallas_call(
        conv_gemm_kernel,
        out_shape=jax.ShapeDtypeStruct((n, C_OUT, HW), x_nchw.dtype),
        grid=(1,),                                               # single grid step
        in_specs=[
            pl.BlockSpec((n, K_PAD, HW), lambda i: (0, 0, 0)),
            pl.BlockSpec((C_OUT, K_PAD), lambda i: (0, 0)),
        ],
        out_specs=pl.BlockSpec((n, C_OUT, HW), lambda i: (0, 0, 0)),
    )(patches, w_mat)

    # Output is already channel-major; only a free reshape back to NCHW remains.
    return out_flat.reshape(n, C_OUT, H_OUT, W_OUT)


def _init_params(key):
    """Deterministic init mimicking nn.Conv2d.reset_parameters (kaiming uniform)."""
    kw_, kb_ = jax.random.split(key)
    fan_in = C_IN * KH * KW
    bound = 1.0 / jnp.sqrt(fan_in)
    weight = jax.random.uniform(kw_, (C_OUT, C_IN, KH, KW),
                                minval=-bound, maxval=bound, dtype=jnp.float32)
    bias = jax.random.uniform(kb_, (C_OUT,),
                              minval=-bound, maxval=bound, dtype=jnp.float32)
    return weight, bias


if __name__ == "__main__":
    key = jax.random.PRNGKey(0)
    kx, kp = jax.random.split(key)
    x = jax.random.normal(kx, (N, C_IN, H, W), dtype=jnp.float32)
    weight, bias = _init_params(kp)

    # One-time parameter folding (out of the per-call path).
    w_mat = jax.block_until_ready(prepare_conv_params(weight, bias))

    out = dummy_conv_forward(x, w_mat)
    out = jax.block_until_ready(out)

    # Reference check against XLA's conv (same semantics as nn.Conv2d).
    ref = lax.conv_general_dilated(
        x, weight, window_strides=(STRIDE, STRIDE),
        padding=((PAD, PAD), (PAD, PAD)),
        dimension_numbers=("NCHW", "OIHW", "NCHW"))
    ref = ref + bias[None, :, None, None]
    assert out.shape == (N, C_OUT, H_OUT, W_OUT)
    assert jnp.allclose(out, ref, atol=1e-5, rtol=1e-5)

    print("KERNEL_OK")
</pallas_src>

<mosaic_0001>
module attributes {stable_mosaic.version = 11 : i64} {
  func.func @conv_gemm_kernel(%arg0: i32, %arg1: memref<2x40x256xf32, #tpu.memory_space<vmem>>, %arg2: memref<8x40xf32, #tpu.memory_space<vmem>>, %arg3: memref<2x8x256xf32, #tpu.memory_space<vmem>>) attributes {dimension_semantics = [#tpu.dimension_semantics<arbitrary>], iteration_bounds = array<i64: 1>, scalar_prefetch = 0 : i64, scratch_operands = 0 : i64, tpu.core_type = #tpu.core_type<tc>, window_params = [{pipeline_mode = #tpu.pipeline_mode<synchronous>, transform_indices = @transform_0, window_bounds = array<i64: 2, 40, 256>}, {pipeline_mode = #tpu.pipeline_mode<synchronous>, transform_indices = @transform_1, window_bounds = array<i64: 8, 40>}, {pipeline_mode = #tpu.pipeline_mode<synchronous>, transform_indices = @transform_2, window_bounds = array<i64: 2, 8, 256>}]} {
    %c0 = arith.constant 0 : index
    %c0_0 = arith.constant 0 : index
    %0 = vector.load %arg2[%c0, %c0_0] : memref<8x40xf32, #tpu.memory_space<vmem>>, vector<8x40xf32>
    %c0_1 = arith.constant 0 : index
    %c0_2 = arith.constant 0 : index
    %c0_3 = arith.constant 0 : index
    %1 = vector.load %arg1[%c0_1, %c0_2, %c0_3] : memref<2x40x256xf32, #tpu.memory_space<vmem>>, vector<1x40x256xf32>
    %2 = vector.shape_cast %1 : vector<1x40x256xf32> to vector<40x256xf32>
    %cst = arith.constant dense<0.000000e+00> : vector<8x256xf32>
    %3 = tpu.matmul %0, %2, %cst {dimension_numbers = #tpu.dot_dimension_numbers<[1], [0], [0], [1], [0, 0, 1, 1], [], []>} : vector<8x40xf32>, vector<40x256xf32>, vector<8x256xf32> -> vector<8x256xf32>
    %c0_4 = arith.constant 0 : index
    %c0_5 = arith.constant 0 : index
    %c0_6 = arith.constant 0 : index
    %4 = vector.load %arg3[%c0_4, %c0_5, %c0_6] : memref<2x8x256xf32, #tpu.memory_space<vmem>>, vector<1x8x256xf32>
    %5 = vector.shape_cast %4 : vector<1x8x256xf32> to vector<8x256xf32>
    %6 = vector.shape_cast %3 : vector<8x256xf32> to vector<1x8x256xf32>
    tpu.vector_store %arg3[%c0_4, %c0_5, %c0_6], %6 {strides = array<i32>} : memref<2x8x256xf32, #tpu.memory_space<vmem>>, vector<1x8x256xf32>,
    %c1 = arith.constant 1 : index
    %c0_7 = arith.constant 0 : index
    %c0_8 = arith.constant 0 : index
    %7 = vector.load %arg1[%c1, %c0_7, %c0_8] : memref<2x40x256xf32, #tpu.memory_space<vmem>>, vector<1x40x256xf32>
    %8 = vector.shape_cast %7 : vector<1x40x256xf32> to vector<40x256xf32>
    %cst_9 = arith.constant dense<0.000000e+00> : vector<8x256xf32>
    %9 = tpu.matmul %0, %8, %cst_9 {dimension_numbers = #tpu.dot_dimension_numbers<[1], [0], [0], [1], [0, 0, 1, 1], [], []>} : vector<8x40xf32>, vector<40x256xf32>, vector<8x256xf32> -> vector<8x256xf32>
    %c1_10 = arith.constant 1 : index
    %c0_11 = arith.constant 0 : index
    %c0_12 = arith.constant 0 : index
    %10 = vector.load %arg3[%c1_10, %c0_11, %c0_12] : memref<2x8x256xf32, #tpu.memory_space<vmem>>, vector<1x8x256xf32>
    %11 = vector.shape_cast %10 : vector<1x8x256xf32> to vector<8x256xf32>
    %12 = vector.shape_cast %9 : vector<8x256xf32> to vector<1x8x256xf32>
    tpu.vector_store %arg3[%c1_10, %c0_11, %c0_12], %12 {strides = array<i32>} : memref<2x8x256xf32, #tpu.memory_space<vmem>>, vector<1x8x256xf32>,
    return
  }
  func.func @transform_0(%arg0: i32) -> (i32, i32, i32) {
    %c0_i32 = arith.constant 0 : i32
    %c0_i32_0 = arith.constant 0 : i32
    %c0_i32_1 = arith.constant 0 : i32
    %c0_i32_2 = arith.constant 0 : i32
    return %c0_i32, %c0_i32_0, %c0_i32_1 : i32, i32, i32
  }
  func.func @transform_1(%arg0: i32) -> (i32, i32) {
    %c0_i32 = arith.constant 0 : i32
    %c0_i32_0 = arith.constant 0 : i32
    %c0_i32_1 = arith.constant 0 : i32
    return %c0_i32, %c0_i32_0 : i32, i32
  }
  func.func @transform_2(%arg0: i32) -> (i32, i32, i32) {
    %c0_i32 = arith.constant 0 : i32
    %c0_i32_0 = arith.constant 0 : i32
    %c0_i32_1 = arith.constant 0 : i32
    %c0_i32_2 = arith.constant 0 : i32
    return %c0_i32, %c0_i32_0, %c0_i32_1 : i32, i32, i32
  }
}

</mosaic_0001>

<bundles_post_ra>
// kernel: dummy_conv_forward.1
= control target key start
LH: loop header
LB: loop body
LE: loop exit
PB: predicated region body
PF: predicated region fallthrough
CT: control target
= control target key end

     0   :  { %v219_v3 = vmov 0.0   ;;  %vm22_vm0 = vcmask 326656   ;;  %s310_s0 = inlined_call_operand.vmem [shape: f32[2,40,256], index: 0, kind: input, shape index: {}]   ;;  %s311_s1 = inlined_call_operand.vmem [shape: f32[8,40], index: 1, kind: input, shape index: {}]   ;;  %s312_s2 = inlined_call_operand.vmem [shape: f32[2,8,256], index: 2, kind: output, shape index: {}]  }
   0x1   :  { %v13_v0 = vld [vmem:[%s310_s0 + $0x8] sm:$0xff]  ;;  %v15_v1 = vld [vmem:[%s310_s0 + $0x18] sm:$0xff]  ;;  %90 = vmatprep.mubr.f32.mxu0 %v219_v3  ;;  %174 = vmatprep.mubr.f32.mxu1 %v219_v3  ;;  %v12_v6 = vld [vmem:[%s310_s0] sm:$0xff] }
   0x2   :  { %v190_v2 = vld [vmem:[%s310_s0 + $0x58] sm:$0xff]  ;;  %v202_v4 = vpack.c.bf16 %v15_v1, %v13_v0  ;;  %v192_v5 = vld [vmem:[%s310_s0 + $0x68] sm:$0xff]  ;;  %v14_v7 = vld [vmem:[%s310_s0 + $0x10] sm:$0xff] }
   0x3   :  { %v210_v8 = vpack.c.bf16 %v192_v5, %v190_v2  ;;  %v204_v9 = vpack.c.bf16 %v14_v7, %v12_v6  ;;  %v189_v10 = vld [vmem:[%s310_s0 + $0x50] sm:$0xff]  ;;  %v191_v11 = vld [vmem:[%s310_s0 + $0x60] sm:$0xff]  ;;  %v17_v12 = vld [vmem:[%s310_s0 + $0x28] sm:$0xff] }
   0x4   :  { %203 = vmatprep.subr.bf16.mxu0 %v202_v4  ;;  %v212_v13 = vpack.c.bf16 %v191_v11, %v189_v10  ;;  %v19_v14 = vld [vmem:[%s310_s0 + $0x38] sm:$0xff]  ;;  %v196_v16 = vld [vmem:[%s310_s0 + $0x88] sm:$0xff]  ;;  %v16_v19 = vld [vmem:[%s310_s0 + $0x20] sm:$0xff] }
   0x5   :  { %v194_v15 = vld [vmem:[%s310_s0 + $0x78] sm:$0xff]  ;;  %211 = vmatprep.subr.bf16.mxu1 %v210_v8  ;;  %205 = vmatpush1.bf16.msra.mxu0 %v204_v9  ;;  %v206_v17 = vpack.c.bf16 %v19_v14, %v17_v12  ;;  %v18_v20 = vld [vmem:[%s310_s0 + $0x30] sm:$0xff]  ;;  %v195_v23 = vld [vmem:[%s310_s0 + $0x80] sm:$0xff] }
   0x6   :  { %v214_v18 = vpack.c.bf16 %v196_v16, %v194_v15  ;;  %v193_v21 = vld [vmem:[%s310_s0 + $0x70] sm:$0xff]  ;;  %213 = vmatpush1.bf16.msra.mxu1 %v212_v13  ;;  %v208_v22 = vpack.c.bf16 %v18_v20, %v16_v19  ;;  %v21_v25 = vld [vmem:[%s310_s0 + $0x48] sm:$0xff]  ;;  %v198_v26 = vld [vmem:[%s310_s0 + $0x98] sm:$0xff] }
   0x7   :  { %207 = vmatprep.subr.bf16.mxu0 %v206_v17  ;;  %v216_v24 = vpack.c.bf16 %v195_v23, %v193_v21  ;;  %v20_v27 = vld [vmem:[%s310_s0 + $0x40] sm:$0xff]  ;;  %v197_v28 = vld [vmem:[%s310_s0 + $0x90] sm:$0xff] }
   0x8   :  { %215 = vmatprep.subr.bf16.mxu1 %v214_v18  ;;  %v11_v29 = vld [vmem:[%s311_s1] sm:$0xff] }
   0x9   :  { %209 = vmatpush1.bf16.msra.mxu0 %v208_v22 }
   0xa   :  { %217 = vmatpush1.bf16.msra.mxu1 %v216_v24  ;;  %34 = vmatprep.subr.mxu0 %v21_v25 }
   0xb   :  { %118 = vmatprep.subr.mxu1 %v198_v26 }
   0xd   :  { %35 = vmatpush1.msra.mxu0 %v20_v27 }
   0xe   :  { %119 = vmatpush1.msra.mxu1 %v197_v28  ;;  %188 = vmatmul.mubr.msk.f32.vlgmr.msra.gmra.mrb[0].mxu0 %vm22_vm0, %v11_v29 }
   0xf   :  { %199 = vmatmul.mubr.msk.f32.vlgmr.msra.gmra.mrb[0].mxu1 %vm22_vm0, %v11_v29 }
  0xe1   :  { %v92_v30 = vpop.f32.mrb[0].mxu0 }
  0xe2   :  { %97 = vst [vmem:[%s312_s2] sm:$0xff] %v92_v30  ;;  %v176_v31 = vpop.f32.mrb[0].mxu1  ;;  %v94_v32 = vpop.f32.mrb[1].mxu0 }
  0xe3   :  { %200 = vst [vmem:[%s312_s2 + $0x10] sm:$0xff] %v176_v31  ;;  %98 = vst [vmem:[%s312_s2 + $0x8] sm:$0xff] %v94_v32  ;;  %v178_v33 = vpop.f32.mrb[1].mxu1 }
  0xe4   :  { %201 = vst [vmem:[%s312_s2 + $0x18] sm:$0xff] %v178_v33 }

</bundles_post_ra>
